<compile_context>
chip_gen: v7x
topology: tpu7x:2x2x1
jax: 0.10.0
libtpu: 0.0.40
codegen_flags: <defaults>
</compile_context>

<pallas_src>
from functools import partial

import jax
import jax.numpy as jnp
from jax.experimental import pallas as pl
from jax.experimental.pallas import tpu as pltpu


def _tv_loss_kernel(x_ref, out_ref, *, c_h, c_w):
    """Computes one tile's scaled TV partial sum.

    x_ref:   (block_bc, H, W) tile resident in VMEM (input dtype).
    out_ref: (1, 8, 128) f32 block; the partial sum is broadcast across the
             whole block so the store is a single unmasked, lane-dense write.
    """
    x = x_ref[...].astype(jnp.float32)          # cast per tile; stream stays in input dtype
    h = x.shape[1]
    w = x.shape[2]

    # Vertical (height) neighbor differences: x[:, 1:, :] - x[:, :-1, :]
    dh = x[:, 1:, :] - x[:, : h - 1, :]
    # Horizontal (width) neighbor differences: x[:, :, 1:] - x[:, :, :-1]
    dw = x[:, :, 1:] - x[:, :, : w - 1]
    # TODO(synk): for small W (< 128 lanes, like the 16x16 test) a lane-folded
    # layout + pltpu.roll-based diff would avoid the off-by-one relayouts and
    # the lane padding waste; kept as plain slices here for robust lowering
    # (realistic image widths >= 128 are already lane-dense in this layout).

    h_tv = jnp.sum(dh * dh)
    w_tv = jnp.sum(dw * dw)

    # Constants (2*weight / (count * batch)) are folded in the wrapper, so the
    # epilogue is a single mul-add per block — no divides in the kernel.
    partial_sum = c_h * h_tv + c_w * w_tv
    out_ref[...] = jnp.broadcast_to(partial_sum, out_ref.shape).astype(jnp.float32)


def _pick_block_bc(bc, h, w, itemsize, max_bytes=2 * 1024 * 1024):
    """Largest divisor of `bc` whose (blk, H, W) tile stays under `max_bytes`.

    ~2 MiB per tile => ~4-5 MiB with double buffering: safe on every
    generation's scoped VMEM default (incl. v7x's 64 MiB physical VMEM).
    """
    best = 1
    for d in range(1, bc + 1):
        if bc % d == 0 and d * h * w * itemsize <= max_bytes:
            best = d
    return best


def tv_loss(x, tv_loss_weight=1.0, block_bc=None):
    """Pallas TPU implementation of TVLoss.forward (NCHW input)."""
    b, c, h, w = x.shape
    bc = b * c

    # Matches PyTorch's _tensor_size on the sliced views.
    count_h = c * (h - 1) * w
    count_w = c * h * (w - 1)

    # Fold weight * 2 / (count * batch) into two scalars (divide-by-zero for
    # degenerate H==1 / W==1 mirrors the PyTorch module's behavior as inf/nan).
    scale = 2.0 * float(tv_loss_weight) / float(b)
    c_h = scale / count_h if count_h > 0 else float("inf")
    c_w = scale / count_w if count_w > 0 else float("inf")

    # Fuse batch and channel: TV diffs never cross this axis (halo-free tiling).
    x3 = x.reshape(bc, h, w)

    if block_bc is None:
        block_bc = _pick_block_bc(bc, h, w, x.dtype.itemsize)
    assert bc % block_bc == 0, (bc, block_bc)
    num_blocks = bc // block_bc
    # TODO(synk): if a single (H, W) slab ever exceeds the VMEM budget, add a
    # second grid axis over H with a 1-row halo.

    kernel = partial(_tv_loss_kernel, c_h=float(c_h), c_w=float(c_w))

    partials = pl.pallas_call(
        kernel,
        out_shape=jax.ShapeDtypeStruct((num_blocks, 8, 128), jnp.float32),
        grid=(num_blocks,),
        in_specs=[pl.BlockSpec((block_bc, h, w), lambda i: (i, 0, 0))],
        out_specs=pl.BlockSpec((1, 8, 128), lambda i: (i, 0, 0)),
        compiler_params=pltpu.CompilerParams(
            # Per-block partial sums => no cross-step carry, so the grid axis
            # is truly parallel (shards across v7x's two TensorCores).
            dimension_semantics=("parallel",),
        ),
    )(x3)

    # Tiny final reduction over the per-block partial sums.
    return jnp.sum(partials[:, 0, 0])


def tv_loss_ref(x, tv_loss_weight=1.0):
    """Pure-JAX reference mirroring the PyTorch forward exactly."""
    b, c, h, w = x.shape
    count_h = c * (h - 1) * w
    count_w = c * h * (w - 1)
    h_tv = jnp.sum((x[:, :, 1:, :] - x[:, :, : h - 1, :]) ** 2)
    w_tv = jnp.sum((x[:, :, :, 1:] - x[:, :, :, : w - 1]) ** 2)
    return tv_loss_weight * 2.0 * (h_tv / count_h + w_tv / count_w) / b


if __name__ == "__main__":
    key = jax.random.PRNGKey(0)
    # Small NCHW input consistent with the module: batch=2, channels=4, 16x16.
    x = jax.random.normal(key, (2, 4, 16, 16), dtype=jnp.float32)

    # block_bc=2 forces a 4-step grid so the tiled/pipelined path and the
    # wrapper-side partial-sum reduction are actually exercised.
    out = jax.block_until_ready(tv_loss(x, tv_loss_weight=1.0, block_bc=2))
    ref = jax.block_until_ready(tv_loss_ref(x, tv_loss_weight=1.0))

    assert jnp.allclose(out, ref, rtol=1e-5, atol=1e-5), (out, ref)
    print("KERNEL_OK")
</pallas_src>

<mosaic_0001>
module attributes {stable_mosaic.version = 11 : i64} {
  func.func @_tv_loss_kernel(%arg0: i32, %arg1: memref<2x16x16xf32, #tpu.memory_space<vmem>>, %arg2: memref<1x8x128xf32, #tpu.memory_space<vmem>>) attributes {dimension_semantics = [#tpu.dimension_semantics<parallel>], iteration_bounds = array<i64: 4>, scalar_prefetch = 0 : i64, scratch_operands = 0 : i64, tpu.core_type = #tpu.core_type<tc>, window_params = [{transform_indices = @transform_0, window_bounds = array<i64: 2, 16, 16>}, {transform_indices = @transform_1, window_bounds = array<i64: 1, 8, 128>}]} {
    %c0 = arith.constant 0 : index
    %c0_0 = arith.constant 0 : index
    %c0_1 = arith.constant 0 : index
    %0 = vector.load %arg1[%c0, %c0_0, %c0_1] : memref<2x16x16xf32, #tpu.memory_space<vmem>>, vector<2x16x16xf32>
    %1 = vector.extract_strided_slice %0 {offsets = [0, 1, 0], sizes = [2, 15, 16], strides = [1, 1, 1]} : vector<2x16x16xf32> to vector<2x15x16xf32>
    %2 = vector.extract_strided_slice %0 {offsets = [0, 0, 0], sizes = [2, 15, 16], strides = [1, 1, 1]} : vector<2x16x16xf32> to vector<2x15x16xf32>
    %3 = arith.subf %1, %2 : vector<2x15x16xf32>
    %4 = vector.extract_strided_slice %0 {offsets = [0, 0, 1], sizes = [2, 16, 15], strides = [1, 1, 1]} : vector<2x16x16xf32> to vector<2x16x15xf32>
    %5 = vector.extract_strided_slice %0 {offsets = [0, 0, 0], sizes = [2, 16, 15], strides = [1, 1, 1]} : vector<2x16x16xf32> to vector<2x16x15xf32>
    %6 = arith.subf %4, %5 : vector<2x16x15xf32>
    %7 = arith.mulf %3, %3 : vector<2x15x16xf32>
    %8 = vector.shape_cast %7 : vector<2x15x16xf32> to vector<1x2x15x16xf32>
    %cst = arith.constant dense<0.000000e+00> : vector<1xf32>
    %9 = vector.multi_reduction <add>, %8, %cst [1, 2, 3] : vector<1x2x15x16xf32> to vector<1xf32>
    %10 = vector.shape_cast %9 : vector<1xf32> to vector<1x1x1x1xf32>
    %11 = vector.extract %10[0, 0, 0, 0] : f32 from vector<1x1x1x1xf32>
    %12 = arith.mulf %6, %6 : vector<2x16x15xf32>
    %13 = vector.shape_cast %12 : vector<2x16x15xf32> to vector<1x2x16x15xf32>
    %cst_2 = arith.constant dense<0.000000e+00> : vector<1xf32>
    %14 = vector.multi_reduction <add>, %13, %cst_2 [1, 2, 3] : vector<1x2x16x15xf32> to vector<1xf32>
    %15 = vector.shape_cast %14 : vector<1xf32> to vector<1x1x1x1xf32>
    %16 = vector.extract %15[0, 0, 0, 0] : f32 from vector<1x1x1x1xf32>
    %cst_3 = arith.constant 0.00104166672 : f32
    %17 = arith.mulf %cst_3, %11 : f32
    %cst_4 = arith.constant 0.00104166672 : f32
    %18 = arith.mulf %cst_4, %16 : f32
    %19 = arith.addf %17, %18 : f32
    %20 = vector.broadcast %19 : f32 to vector<1x8x128xf32>
    %c0_5 = arith.constant 0 : index
    %c0_6 = arith.constant 0 : index
    %c0_7 = arith.constant 0 : index
    %21 = vector.load %arg2[%c0_5, %c0_6, %c0_7] : memref<1x8x128xf32, #tpu.memory_space<vmem>>, vector<1x8x128xf32>
    tpu.vector_store %arg2[%c0_5, %c0_6, %c0_7], %20 {strides = array<i32>} : memref<1x8x128xf32, #tpu.memory_space<vmem>>, vector<1x8x128xf32>,
    return
  }
  func.func @transform_0(%arg0: i32) -> (i32, i32, i32) {
    %c0_i32 = arith.constant 0 : i32
    %c0_i32_0 = arith.constant 0 : i32
    %c0_i32_1 = arith.constant 0 : i32
    return %arg0, %c0_i32, %c0_i32_0 : i32, i32, i32
  }
  func.func @transform_1(%arg0: i32) -> (i32, i32, i32) {
    %c0_i32 = arith.constant 0 : i32
    %c0_i32_0 = arith.constant 0 : i32
    %c0_i32_1 = arith.constant 0 : i32
    return %arg0, %c0_i32, %c0_i32_0 : i32, i32, i32
  }
}

</mosaic_0001>

<bundles_post_ra>
// kernel: tpu_custom_call.1
= control target key start
LH: loop header
LB: loop body
LE: loop exit
PB: predicated region body
PF: predicated region fallthrough
CT: control target
= control target key end

     0   :  { %6 = vsyncpa [#allocation3], 0  ;;  %s682_s0 = inlined_call_operand.hbm [shape: f32[8,16,16], index: 0, kind: input, shape index: {}]   ;;  %s683_s1 = inlined_call_operand.hbm [shape: f32[4,8,128], index: 1, kind: output, shape index: {}]  }
   0x1   :  { %8 = vsyncpa [#allocation3 + $0x1], 0 }
   0x2   :  { %9 = vsyncpa [#allocation4], 0 }
   0x3   :  { %11 = vsyncpa [#allocation4 + $0x1], 0  ;;  %s523_s6 = smov 0   ;;  %s525_s7 = smov 0  }
   0x4   :  { %s527_s8 = smov 0   ;;  %s529_s9 = smov 0  }
   0x5 LB: > { %s544_s10 = sadd.s32 4294967295, %s505_s9   ;;  %s339_s11 = sadd.s32 4294967294, %s505_s9   ;;  %s505_s9 = sphi %s529_s9, %s695_s9   ;;  %s501_s8 = sphi %s527_s8, %s694_s8   ;;  %s497_s7 = sphi %s525_s7, %s693_s7   ;;  %s493_s6 = sphi %s523_s6, %s692_s6  }
   0x6   : > { %s548_s12 = sadd.s32 1, %s505_s9   ;;  %s24_s13 = sadd.s32 1, %s501_s8 }
   0x7   : > { %s21_s14 = ssub.s32 %s505_s9, %s548_s12  ;;  %p31_p0 = scmp.ne.s32.totalorder %s501_s8, %s497_s7 }
   0x8   : > { %p22_p1 = scmp.eq.s32.totalorder %s21_s14, 0  ;;  %p32_p2 = scmp.eq.s32.totalorder %s505_s9, 0 }
   0x9   : > { %p37_p3 = scmp.ne.s32.totalorder %s497_s7, %s493_s6  ;;  %p38_p4 = scmp.eq.s32.totalorder %s544_s10, 0 }
   0xa   : > { %s560_s15 = scalar_select %p22_p1, %s501_s8, %s24_s13  }
   0xb   : > { %p562_p5 = por %p32_p2, %p31_p0  ;;  %p566_p6 = por %p38_p4, %p37_p3 }
   0xc   : > { %p61_p7 = scmp.eq.s32.totalorder %s544_s10, 3  ;;  %p67_p8 = scmp.eq.s32.totalorder %s339_s11, 3 }
   0xd   : > { %p371_p9 = scmp.lt.s32.totalorder %s505_s9, 4  ;;  %s87_s20 = sand.u32 1, %s501_s8  }
   0xe   : > { %p572_p10 = por %p61_p7, %p31_p0  ;;  %p576_p11 = por %p67_p8, %p37_p3 }
   0xf   : > { %s354_s21 = sshll.u32 %s505_s9, 9  ;;  %s342_s22 = sshll.u32 %s87_s20, 5 }
  0x10   : > { %s687_s18 = scalar_select %p572_p10, 1, 0 }
  0x11   : > { %s688_s19 = scalar_select %p576_p11, 1, 0 }
  0x12   : > { %s585_s25 = scalar_lea.hbm %s682_s0, %s354_s21  ;;  %s91_s26 = scalar_lea.vmem [#allocation2], %s342_s22 }
  0x13   : > { %s99_s27 = sshll.u32 %s91_s26, 4  ;;  %p589_p12 = pnand %p371_p9, %p562_p5  ;;  %s593_s27 = int_to_ptr.vmem [resolvable:$true] %s99_s27 }
  0x14   : > { %s595_s29 = scalar_lea.sflag [#allocation3], %s87_s20  ;;  %s409_s30 = scalar_lea.hbm %s585_s25, 512 }
  0x15   : > { %p410_p13 = scmp.ne.s32.totalorder %s585_s25, %s409_s30  ;;  %p411_p0 = pneg %p589_p12 }
  0x16   : > { %s414_s4 = scalar_lea.hbm %s682_s0, 2048  ;;  %p415_p3 = scmp.lt.u32.totalorder %s585_s25, %s682_s0 }
  0x17   : > { %p412_p1 = pnand %p411_p0, %p410_p13  ;;  %p416_p4 = scmp.lt.u32.totalorder %s414_s4, %s409_s30 }
  0x18   : > { %p418_p7 = scmp.lt.u32.totalorder %s409_s30, %s585_s25 }
  0x19   : > { %p413_p2 = pneg %p412_p1  ;;  %p417_p5 = por %p416_p4, %p415_p3 }
  0x1b   : > { %p419_p8 = por %p418_p7, %p417_p5 }
  0x1d   : > { %p420_p9 = pnand %p419_p8, %p413_p2 }
  0x1f   : > { %423 = shalt.err (!%p420_p9)
}
  0x20   : > { %s424_s13 = scalar_lea.vmem %s593_s27, 512  ;;  %s507_s14 = smov [#allocation2]  }
  0x21   : > { %p425_p13 = scmp.ne.s32.totalorder %s593_s27, %s424_s13  ;;  %s429_s16 = sshll.u32 %s507_s14, 4  ;;  %s430_s16 = int_to_ptr.vmem [resolvable:$false] %s429_s16 }
  0x22   : > { %s431_s20 = scalar_lea.vmem %s430_s16, 1024  ;;  %p432_p10 = scmp.lt.s32.totalorder %s593_s27, %s430_s16 }
  0x23   : > { %p427_p1 = pnand %p425_p13, %p411_p0  ;;  %p433_p3 = scmp.lt.s32.totalorder %s431_s20, %s424_s13 }
  0x25   : > { %p428_p11 = pneg %p427_p1  ;;  %p434_p4 = por %p433_p3, %p432_p10 }
  0x27   : > { %p435_p5 = pnand %p434_p4, %p428_p11 }
  0x29   : > { %438 = shalt.err (!%p435_p5)
}
  0x2a   : > { %s508_s21 = smov 128   ;;  %s509_s22 = smov 8  }
  0x2b   : > { %366 = dma.hbm_to_vmem [thread:$0]  (!%p589_p12), %s585_s25, 512, %s593_s27, %s595_s29, %s508_s21, %s508_s21, %s509_s22  }
  0x2c   : > { %p346_p0 = scmp.ge.s32.totalorder %s505_s9, 1  ;;  %p107_p2 = scmp.lt.s32.totalorder %s505_s9, 5 }
  0x2e   : > { %p108_p7 = pnand %p346_p0, %p107_p2 }
  0x2f   : > { %s626_s23 = sand.u32 (!%p108_p7), 1, %s497_s7  }
  0x30   : > { %111 = sbr.rel (%p108_p7) target bundleno = 525 (0x20d), region = 24  ;;  %s347_s24 = sshll.u32 (!%p108_p7), %s626_s23, 5 }
  0x31   : > { %s114_s26 = scalar_lea.sflag (!%p108_p7), [#allocation3], %s626_s23  ;;  %s117_s30 = scalar_lea.vmem (!%p108_p7), [#allocation2], %s347_s24 }
  0x37   : > { %484 = dma.done.wait (%p566_p6), %s114_s26, 512  }
  0x38   : > { %486 = vsyncadd (%p566_p6), %s114_s26, 4294966784  ;;  %v137_v0 = vld [vmem:[%s117_s30] sm:$0xff]  ;;  %v139_v1 = vld [vmem:[%s117_s30 + $0x10] sm:$0xff]  ;;  %s510_s25 = smov 1   ;;  %vm145_vm0 = vcmask 1040384   ;;  %s511_s17 = smov 127  }
  0x39   : > { %160 = vrot.lane.b32.xlu0 %v137_v0, %s510_s25  ;;  %164 = vrot.lane.b32.xlu1 %v139_v1, %s510_s25  ;;  %v138_v2 = vld [vmem:[%s117_s30 + $0x8] sm:$0xff]  ;;  %v140_v3 = vld [vmem:[%s117_s30 + $0x18] sm:$0xff]  ;;  %v146_v8 = vrot.slane %v137_v0, 7  ;;  %v149_v16 = vrot.slane %v139_v1, 7  ;;  %vm184_vm1 = vcmask 1046528   ;;  %vm195_vm2 = vcmask 130048  }
  0x3a   : > { %v147_v9 = vrot.slane %v138_v2, 7  ;;  %v150_v17 = vrot.slane %v140_v3, 7  ;;  %vm197_vm3 = vcmask 129024   ;;  %vm233_vm4 = vcmask 121856   ;;  %s348_s27 = sshll.u32 %s626_s23, 3  ;;  %s350_s29 = sshll.u32 %s544_s10, 7 }
  0x3b   : > { %v156_v21 = vsub.f32 %v137_v0, %v146_v8  ;;  %v158_v24 = vsub.f32 %v139_v1, %v149_v16  ;;  %s135_s5 = scalar_lea.vmem [#allocation5], %s348_s27  ;;  %s639_s20 = scalar_lea.hbm %s683_s1, %s350_s29 }
  0x3c   : > { %v148_v19 = vsel %vm145_vm0, %v146_v8, %v147_v9  ;;  %v151_v23 = vsel %vm145_vm0, %v149_v16, %v150_v17  ;;  %s269_s11 = sshll.u32 %s135_s5, 4  ;;  %s256_s21 = scalar_lea.sflag [#allocation4], %s626_s23  ;;  %s641_s11 = int_to_ptr.vmem [resolvable:$true] %s269_s11 }
  0x3d   : > { %162 = vrot.lane.b32.xlu0 %v138_v2, %s510_s25  ;;  %166 = vrot.lane.b32.xlu1 %v140_v3, %s510_s25  ;;  %v157_v22 = vsub.f32 %v138_v2, %v148_v19  ;;  %v176_v25 = vmul.f32 %v156_v21, %v156_v21  ;;  %v159_v26 = vsub.f32 %v140_v3, %v151_v23  ;;  %s439_s10 = scalar_lea.vmem %s641_s11, 128  ;;  %p690_p10 = scmp.ne.s32.totalorder %s687_s18, 0 }
  0x3e   : > { %v178_v28 = vmul.f32 %v158_v24, %v158_v24  ;;  %p440_p6 = scmp.ne.s32.totalorder %s641_s11, %s439_s10  ;;  %s512_s22 = smov [#allocation5]  }
  0x3f   : > { %v177_v27 = vmul.f32 %v157_v22, %v157_v22  ;;  %v185_v29 = vrot.slane %v176_v25, 1  ;;  %v179_v30 = vmul.f32 %v159_v26, %v159_v26  ;;  %s443_s24 = sshll.u32 %s512_s22, 4  ;;  %s444_s24 = int_to_ptr.vmem [resolvable:$false] %s443_s24 }
  0x40   : > { %v188_v32 = vrot.slane %v178_v28, 1  ;;  %p441_p11 = pnand %p440_p6, %p690_p10  ;;  %s445_s26 = scalar_lea.vmem %s444_s24, 256 }
  0x41   : > { %v186_v31 = vrot.slane %v177_v27, 1  ;;  %v189_v34 = vrot.slane %v179_v30, 1  ;;  %p446_p8 = scmp.lt.s32.totalorder %s641_s11, %s444_s24  ;;  %p447_p9 = scmp.lt.s32.totalorder %s445_s26, %s439_s10 }
  0x42   : > { %p442_p12 = pneg %p441_p11 }
  0x43   : > { %v187_v33 = vsel %vm184_vm1, %v185_v29, %v186_v31  ;;  %v198_v36 = vsel %vm197_vm3, %v186_v31, 0.0  ;;  %v190_v37 = vsel %vm184_vm1, %v188_v32, %v189_v34  ;;  %v202_v41 = vsel %vm197_vm3, %v189_v34, 0.0  ;;  %p448_p13 = por %p447_p9, %p446_p8 }
  0x44   : > { %v196_v35 = vsel %vm195_vm2, %v187_v33, 0.0  ;;  %v200_v39 = vsel %vm195_vm2, %v190_v37, 0.0 }
  0x45   : > { %v199_v38 = vadd.f32 %v198_v36, %v196_v35  ;;  %p449_p1 = pnand %p448_p13, %p442_p12 }
  0x47   : > { %v201_v40 = vadd.f32 %v200_v39, %v199_v38 }
  0x49   : > { %v203_v42 = vadd.f32 %v202_v41, %v201_v40 }
  0xab   : > { %v161_v4 = vpop.permute.xlu0 %160  ;;  %v165_v5 = vpop.permute.xlu1 %164 }
  0xac   : > { %v172_v6 = vsub.f32 %v137_v0, %v161_v4  ;;  %v174_v7 = vsub.f32 %v139_v1, %v165_v5 }
  0xae   : > { %v213_v10 = vmul.f32 %v172_v6, %v172_v6  ;;  %v215_v13 = vmul.f32 %v174_v7, %v174_v7 }
  0xaf   : > { %v163_v11 = vpop.permute.xlu0 %162  ;;  %v167_v12 = vpop.permute.xlu1 %166 }
  0xb0   : > { %v173_v14 = vsub.f32 %v138_v2, %v163_v11  ;;  %221 = vrot.lane.b32.xlu0 %v213_v10, %s511_s17  ;;  %v175_v15 = vsub.f32 %v140_v3, %v167_v12 }
  0xb2   : > { %v214_v18 = vmul.f32 %v173_v14, %v173_v14  ;;  %v216_v20 = vmul.f32 %v175_v15, %v175_v15 }
  0xb4   : > { %225 = vrot.lane.b32.xlu0 %v215_v13, %s511_s17  ;;  %223 = vrot.lane.b32.xlu1 %v214_v18, %s511_s17 }
  0xb8   : > { %227 = vrot.lane.b32.xlu1 %v216_v20, %s511_s17 }
  0xd3   : > { %204 = vadd.xlane.f32.xlu0 %v203_v42 }
 0x122   : > { %v222_v43 = vpop.permute.xlu0 %221 }
 0x123   : > { %v234_v46 = vsel %vm233_vm4, %v222_v43, 0.0 }
 0x126   : > { %v224_v44 = vpop.permute.xlu1 %223  ;;  %v226_v45 = vpop.permute.xlu0 %225 }
 0x127   : > { %v235_v47 = vsel %vm233_vm4, %v224_v44, 0.0  ;;  %v237_v49 = vsel %vm233_vm4, %v226_v45, 0.0 }
 0x128   : > { %v236_v48 = vadd.f32 %v235_v47, %v234_v46 }
 0x12a   : > { %v238_v50 = vadd.f32 %v237_v49, %v236_v48  ;;  %v228_v51 = vpop.permute.xlu1 %227 }
 0x12b   : > { %v239_v52 = vsel %vm233_vm4, %v228_v51, 0.0 }
 0x12c   : > { %v240_v53 = vadd.f32 %v239_v52, %v238_v50 }
 0x12e   : > { %241 = vadd.xlane.f32.xlu1 %v240_v53 }
 0x160   : > { %v205_v54 = vpop.xlane.xlu0 %204 }
 0x161   : > { %v206_v55 = vrot.slane %v205_v54, 4 }
 0x163   : > { %v207_v56 = vadd.f32 %v206_v55, %v205_v54 }
 0x165   : > { %v208_v57 = vrot.slane %v207_v56, 2 }
 0x167   : > { %v209_v58 = vadd.f32 %v208_v57, %v207_v56 }
 0x169   : > { %v210_v59 = vrot.slane %v209_v58, 1 }
 0x16b   : > { %v211_v60 = vadd.f32 %v210_v59, %v209_v58 }
 0x16d   : > { %355 = vpush %v211_v60 }
 0x19e   : > { %s356_s28 = spop %355 }
 0x19f   : > { %s250_s2 = smul.f32 0.0010416667, %s356_s28 }
 0x1bb   : > { %v242_v61 = vpop.xlane.xlu1 %241 }
 0x1bc   : > { %v243_v62 = vrot.slane %v242_v61, 4 }
 0x1be   : > { %v244_v63 = vadd.f32 %v243_v62, %v242_v61 }
 0x1c0   : > { %v245_v0 = vrot.slane %v244_v63, 2 }
 0x1c2   : > { %v246_v1 = vadd.f32 %v245_v0, %v244_v63 }
 0x1c4   : > { %v247_v2 = vrot.slane %v246_v1, 1 }
 0x1c6   : > { %v248_v3 = vadd.f32 %v247_v2, %v246_v1 }
 0x1c8   : > { %357 = vpush %v248_v3 }
 0x1f9   : > { %s358_s3 = spop %357 }
 0x1fa   : > { %s251_s4 = smul.f32 0.0010416667, %s358_s3 }
 0x1fc   : > { %s252_s13 = sadd.f32 %s251_s4, %s250_s2 }
 0x1fe   : > { %v253_v4 = vstv %s252_s13 }
 0x1ff   : > { %254 = vst [vmem:[%s135_s5] sm:$0xff] %v253_v4 }
 0x200   : > { %452 = shalt.err (!%p449_p1)
}
 0x201   : > { %s453_s23 = scalar_lea.hbm %s639_s20, 128  ;;  %s457_s17 = scalar_lea.hbm %s683_s1, 512 }
 0x202   : > { %p454_p3 = scmp.ne.s32.totalorder %s639_s20, %s453_s23  ;;  %p458_p0 = scmp.lt.u32.totalorder %s639_s20, %s683_s1 }
 0x203   : > { %p459_p2 = scmp.lt.u32.totalorder %s457_s17, %s453_s23  ;;  %p461_p6 = scmp.lt.u32.totalorder %s453_s23, %s639_s20 }
 0x204   : > { %p455_p4 = pnand %p454_p3, %p690_p10 }
 0x205   : > { %p460_p7 = por %p459_p2, %p458_p0 }
 0x206   : > { %p456_p5 = pneg %p455_p4 }
 0x207   : > { %p462_p11 = por %p461_p6, %p460_p7 }
 0x209   : > { %p463_p12 = pnand %p462_p11, %p456_p5 }
 0x20b   : > { %466 = shalt.err (!%p463_p12)
}
 0x20c   : > { %361 = dma.vmem_to_hbm [thread:$0]  (%p690_p10), %s641_s11, 128, %s639_s20, %s256_s21  }
 0x20d PF: > { %p372_p8 = scmp.ge.s32.totalorder %s505_s9, 2  ;;  %s281_s29 = sand.u32 1, %s493_s6  }
 0x20e   : > { %p691_p9 = scmp.ne.s32.totalorder %s688_s19, 0  ;;  %s282_s2 = scalar_lea.sflag [#allocation4], %s281_s29 }
 0x210   : > { %p368_p13 = pnand %p372_p8, %p691_p9 }
 0x212   : > { %488 = dma.done.wait (!%p368_p13), %s282_s2, 128  }
 0x213   : > { %490 = vsyncadd (!%p368_p13), %s282_s2, 4294967168  ;;  %p14_p1 = scmp.ge.s32.totalorder %s548_s12, 6   ;;  %s692_s6 = smov %s497_s7 }
 0x214   : > { %s693_s7 = smov %s501_s8  ;;  %s694_s8 = smov %s560_s15 }
 0x215   : > { %s695_s9 = smov %s548_s12  ;;  %16 = sbr.rel (!%p14_p1) target bundleno = 5 (0x5), region = 69 }
 0x21c   :  { %287 = vsyncpa [#allocation3], 1 }
 0x21d   :  { %289 = vsyncpa [#allocation3 + $0x1], 1 }
 0x21e   :  { %290 = vsyncpa [#allocation4], 1 }
 0x21f   :  { %292 = vsyncpa [#allocation4 + $0x1], 1 }

</bundles_post_ra>
